<compile_context>
chip_gen: v7x
topology: tpu7x:2x2x1
jax: 0.10.0
libtpu: 0.0.40
codegen_flags: <defaults>
</compile_context>

<pallas_src>
import functools

import jax
import jax.numpy as jnp
from jax.experimental import pallas as pl
from jax.experimental.pallas import tpu as pltpu


def mlp_kernel(x_ref, w1T_ref, b1_ref, w2c_ref, b2_ref, o_ref):
    # x_ref  : (TB, D)  input rows (contiguous HBM tile, batch-major)
    # w1T_ref: (H, D)   W1 transposed, resident across the grid
    # b1_ref : (H, 1)   f32 bias, broadcast over lanes
    # w2c_ref: (H, 1)   f32 second-layer weight column
    # b2_ref : (1, 1)   f32 scalar in SMEM
    # o_ref  : (1, TB)  f32 lane-dense output (batch on lanes)
    w1 = w1T_ref[...].astype(jnp.float32)
    xb = x_ref[...].astype(jnp.float32)
    # (H, D) contracted with (TB, D) over D -> (H, TB); the operand transpose
    # happens in VMEM (XLU) instead of a separate XLA transpose through HBM.
    h = jax.lax.dot_general(
        w1, xb,
        dimension_numbers=(((1,), (1,)), ((), ())),
        preferred_element_type=jnp.float32)                  # (H, TB)
    h = jnp.maximum(h + b1_ref[...], 0.0)                    # bias + ReLU (VPU)
    # Second layer has output width 1: a full MXU pass would cost as much as
    # the first matmul, so do it as VPU multiply + sublane reduce instead.
    out = jnp.sum(h * w2c_ref[...], axis=0, keepdims=True)   # (1, TB)
    o_ref[...] = (out + b2_ref[0, 0]).astype(o_ref.dtype)


def prepare_mlp_params(w1, b1, w2, b2, compute_dtype=jnp.float32):
    """One-time weight prep (hoisted out of the per-call path)."""
    H = w1.shape[1]
    return dict(
        w1T=jnp.asarray(w1, compute_dtype).T,                 # (H, D)
        b1=jnp.asarray(b1, jnp.float32).reshape(H, 1),        # (H, 1)
        w2c=jnp.asarray(w2, jnp.float32).reshape(H, 1),       # (H, 1)
        b2=jnp.asarray(b2, jnp.float32).reshape(1, 1),         # SMEM scalar
    )


@functools.partial(jax.jit, static_argnames=("block_b",))
def mlp_forward(x, params, *, block_b=2048):
    """PyTorch-Linear semantics: out = relu(x @ W1 + b1) @ W2 + b2.

    x : (B, D); params from prepare_mlp_params().
    """
    B, D = x.shape
    H = params["w1T"].shape[0]

    # Batch-on-lanes tiling: lane axis in 128-multiples; large tiles amortize
    # the ~0.35us/grid-step overhead.  Keep >=2 blocks when the batch spans
    # multiple tiles so v7x's two TensorCores both get work.
    lane = 128
    b_rounded = ((B + lane - 1) // lane) * lane
    tb = max(lane, min((block_b // lane) * lane, b_rounded))
    if b_rounded > lane and (b_rounded // tb) < 2:
        tb = max(lane, ((b_rounded // 2 + lane - 1) // lane) * lane)
    n_blocks = (b_rounded + tb - 1) // tb
    B_pad = n_blocks * tb

    x_c = x.astype(params["w1T"].dtype)
    if B_pad != B:
        x_c = jnp.pad(x_c, ((0, B_pad - B), (0, 0)))   # padded rows discarded below

    cost = pl.CostEstimate(
        flops=2 * B_pad * D * H + 4 * B_pad * H,
        transcendentals=0,
        bytes_accessed=(B_pad * D * 4 + H * D * 4 + 2 * H * 4 + 4 + B_pad * 4),
    )

    outT = pl.pallas_call(
        mlp_kernel,
        out_shape=jax.ShapeDtypeStruct((1, B_pad), jnp.float32),
        grid_spec=pltpu.PrefetchScalarGridSpec(
            num_scalar_prefetch=0,
            grid=(n_blocks,),
            in_specs=[
                pl.BlockSpec((tb, D), lambda i: (i, 0)),            # x row tile
                pl.BlockSpec((H, D), lambda i: (0, 0)),             # W1^T resident
                pl.BlockSpec((H, 1), lambda i: (0, 0)),             # b1
                pl.BlockSpec((H, 1), lambda i: (0, 0)),             # w2 column
                pl.BlockSpec(memory_space=pltpu.MemorySpace.SMEM),  # b2 scalar
            ],
            out_specs=pl.BlockSpec((1, tb), lambda i: (0, i)),      # lane-dense out
        ),
        compiler_params=pltpu.CompilerParams(
            dimension_semantics=("parallel",),   # >1 block -> shards across v7x TCs
        ),
        cost_estimate=cost,
    )(x_c, params["w1T"], params["b1"], params["w2c"], params["b2"])

    # Un-pad and restore the (B, 1) PyTorch output layout.
    return outT[0, :B].reshape(B, 1).astype(x.dtype)


if __name__ == "__main__":
    # hparams: base_dim=32, mlp_hidden=32 ; batch=8
    B, base_dim, mlp_hidden = 8, 32, 32

    key = jax.random.PRNGKey(0)
    kx, k1, kb1, k2, kb2 = jax.random.split(key, 5)

    lim1 = 1.0 / (base_dim ** 0.5)
    lim2 = 1.0 / (mlp_hidden ** 0.5)
    x = jax.random.normal(kx, (B, base_dim), dtype=jnp.float32)
    w1 = jax.random.uniform(k1, (base_dim, mlp_hidden), jnp.float32, -lim1, lim1)
    b1 = jax.random.uniform(kb1, (mlp_hidden,), jnp.float32, -lim1, lim1)
    w2 = jax.random.uniform(k2, (mlp_hidden, 1), jnp.float32, -lim2, lim2)
    b2 = jax.random.uniform(kb2, (1,), jnp.float32, -lim2, lim2)

    # Weight prep happens once (serving-style); the per-call path only pads x.
    params = prepare_mlp_params(w1, b1, w2, b2)

    out = mlp_forward(x, params)
    jax.block_until_ready(out)

    # Pure f32 reference (kernel is f32 end-to-end).
    ref = jnp.maximum(x @ w1 + b1[None, :], 0.0) @ w2 + b2[None, :]

    assert out.shape == (B, 1), out.shape
    assert jnp.allclose(out, ref, atol=1e-4, rtol=1e-4), "mismatch vs reference"

    print("KERNEL_OK")
</pallas_src>

<mosaic_0001>
module attributes {stable_mosaic.version = 11 : i64} {
  func.func @mlp_kernel(%arg0: i32, %arg1: memref<128x32xf32, #tpu.memory_space<vmem>>, %arg2: memref<32x32xf32, #tpu.memory_space<vmem>>, %arg3: memref<32x1xf32, #tpu.memory_space<vmem>>, %arg4: memref<32x1xf32, #tpu.memory_space<vmem>>, %arg5: memref<1x1xf32, #tpu.memory_space<smem>>, %arg6: memref<1x128xf32, #tpu.memory_space<vmem>>) attributes {dimension_semantics = [#tpu.dimension_semantics<parallel>], iteration_bounds = array<i64: 1>, scalar_prefetch = 0 : i64, scratch_operands = 0 : i64, tpu.core_type = #tpu.core_type<tc>, window_params = [{transform_indices = @transform_0, window_bounds = array<i64: 128, 32>}, {pipeline_mode = #tpu.pipeline_mode<synchronous>, transform_indices = @transform_1, window_bounds = array<i64: 32, 32>}, {pipeline_mode = #tpu.pipeline_mode<synchronous>, transform_indices = @transform_2, window_bounds = array<i64: 32, 1>}, {pipeline_mode = #tpu.pipeline_mode<synchronous>, transform_indices = @transform_3, window_bounds = array<i64: 32, 1>}, {transform_indices = @transform_4, window_bounds = array<i64: 1, 1>}, {transform_indices = @transform_5, window_bounds = array<i64: 1, 128>}]} {
    %c0 = arith.constant 0 : index
    %c0_0 = arith.constant 0 : index
    %0 = vector.load %arg2[%c0, %c0_0] : memref<32x32xf32, #tpu.memory_space<vmem>>, vector<32x32xf32>
    %c0_1 = arith.constant 0 : index
    %c0_2 = arith.constant 0 : index
    %1 = vector.load %arg1[%c0_1, %c0_2] : memref<128x32xf32, #tpu.memory_space<vmem>>, vector<128x32xf32>
    %cst = arith.constant dense<0.000000e+00> : vector<32x128xf32>
    %2 = tpu.matmul %0, %1, %cst {dimension_numbers = #tpu.dot_dimension_numbers<[1], [1], [0], [0], [0, 0, 1, 0], [], []>} : vector<32x32xf32>, vector<128x32xf32>, vector<32x128xf32> -> vector<32x128xf32>
    %c0_3 = arith.constant 0 : index
    %c0_4 = arith.constant 0 : index
    %3 = vector.load %arg3[%c0_3, %c0_4] : memref<32x1xf32, #tpu.memory_space<vmem>>, vector<32x1xf32>
    %4 = vector.broadcast %3 : vector<32x1xf32> to vector<32x128xf32>
    %5 = arith.addf %2, %4 : vector<32x128xf32>
    %cst_5 = arith.constant 0.000000e+00 : f32
    %6 = vector.broadcast %cst_5 : f32 to vector<32x128xf32>
    %7 = arith.maximumf %5, %6 : vector<32x128xf32>
    %c0_6 = arith.constant 0 : index
    %c0_7 = arith.constant 0 : index
    %8 = vector.load %arg4[%c0_6, %c0_7] : memref<32x1xf32, #tpu.memory_space<vmem>>, vector<32x1xf32>
    %9 = vector.broadcast %8 : vector<32x1xf32> to vector<32x128xf32>
    %10 = arith.mulf %7, %9 : vector<32x128xf32>
    %cst_8 = arith.constant dense<0.000000e+00> : vector<128xf32>
    %11 = vector.multi_reduction <add>, %10, %cst_8 [0] : vector<32x128xf32> to vector<128xf32>
    %12 = vector.shape_cast %11 : vector<128xf32> to vector<1x128xf32>
    %c0_9 = arith.constant 0 : index
    %c0_10 = arith.constant 0 : index
    %13 = memref.load %arg5[%c0_9, %c0_10] : memref<1x1xf32, #tpu.memory_space<smem>>
    %14 = vector.broadcast %13 : f32 to vector<1x128xf32>
    %15 = arith.addf %12, %14 : vector<1x128xf32>
    %c0_11 = arith.constant 0 : index
    %c0_12 = arith.constant 0 : index
    %16 = vector.load %arg6[%c0_11, %c0_12] : memref<1x128xf32, #tpu.memory_space<vmem>>, vector<1x128xf32>
    tpu.vector_store %arg6[%c0_11, %c0_12], %15 {strides = array<i32>} : memref<1x128xf32, #tpu.memory_space<vmem>>, vector<1x128xf32>,
    return
  }
  func.func @transform_0(%arg0: i32) -> (i32, i32) {
    %c0_i32 = arith.constant 0 : i32
    %c0_i32_0 = arith.constant 0 : i32
    return %arg0, %c0_i32 : i32, i32
  }
  func.func @transform_1(%arg0: i32) -> (i32, i32) {
    %c0_i32 = arith.constant 0 : i32
    %c0_i32_0 = arith.constant 0 : i32
    %c0_i32_1 = arith.constant 0 : i32
    return %c0_i32, %c0_i32_0 : i32, i32
  }
  func.func @transform_2(%arg0: i32) -> (i32, i32) {
    %c0_i32 = arith.constant 0 : i32
    %c0_i32_0 = arith.constant 0 : i32
    %c0_i32_1 = arith.constant 0 : i32
    return %c0_i32, %c0_i32_0 : i32, i32
  }
  func.func @transform_3(%arg0: i32) -> (i32, i32) {
    %c0_i32 = arith.constant 0 : i32
    %c0_i32_0 = arith.constant 0 : i32
    %c0_i32_1 = arith.constant 0 : i32
    return %c0_i32, %c0_i32_0 : i32, i32
  }
  func.func @transform_4(%arg0: i32) -> (i32, i32) {
    %c0_i32 = arith.constant 0 : i32
    %c0_i32_0 = arith.constant 0 : i32
    %c0_i32_1 = arith.constant 0 : i32
    return %c0_i32, %c0_i32_0 : i32, i32
  }
  func.func @transform_5(%arg0: i32) -> (i32, i32) {
    %c0_i32 = arith.constant 0 : i32
    %c0_i32_0 = arith.constant 0 : i32
    return %c0_i32, %arg0 : i32, i32
  }
}

</mosaic_0001>

<bundles_post_ra>
// kernel: mlp_forward.1
= control target key start
LH: loop header
LB: loop body
LE: loop exit
PB: predicated region body
PF: predicated region fallthrough
CT: control target
= control target key end

     0   :  { %vm65_vm0 = vcmask 261120   ;;  %v405_v3 = vmov 0   ;;  %s600_s0 = inlined_call_operand.vmem [shape: f32[128,32], index: 0, kind: input, shape index: {}]   ;;  %s601_s1 = inlined_call_operand.vmem [shape: f32[32,32], index: 1, kind: input, shape index: {}]   ;;  %s602_s2 = inlined_call_operand.vmem [shape: f32[32,1], index: 2, kind: input, shape index: {}]   ;;  %s603_s3 = inlined_call_operand.vmem [shape: f32[32,1], index: 3, kind: input, shape index: {}]   ;;  %s604_s4 = inlined_call_operand.<no memory space> [shape: f32[1,1], index: 4, kind: input, shape index: {}]   ;;  %s605_s5 = inlined_call_operand.vmem [shape: f32[1,128], index: 5, kind: output, shape index: {}]  }
   0x1   :  { %v25_v0 = vld [vmem:[%s600_s0] sm:$0xff]  ;;  %v26_v1 = vld [vmem:[%s600_s0 + $0x8] sm:$0xff]  ;;  %vm444_vm1 = vmpackc.low %vm65_vm0, %vm65_vm0  ;;  %403 = vset.pattern.permute.xlu0 %v405_v3  ;;  %404 = vset.pattern.permute.xlu1 %v405_v3 }
   0x2   :  { %v338_v4 = vpack.c.bf16 %v26_v1, %v25_v0  ;;  %v27_v5 = vld [vmem:[%s600_s0 + $0x10] sm:$0xff]  ;;  %v28_v6 = vld [vmem:[%s600_s0 + $0x18] sm:$0xff]  ;;  %v21_v8 = vld [vmem:[%s601_s1] sm:$0xff] }
   0x3   :  { %v344_v7 = vpack.c.bf16 %v28_v6, %v27_v5  ;;  %v29_v9 = vld [vmem:[%s600_s0 + $0x20] sm:$0xff]  ;;  %v30_v10 = vld [vmem:[%s600_s0 + $0x28] sm:$0xff]  ;;  %332 = vmatprep.mubr.msk.f32.mxu0 %vm65_vm0, %v21_v8  ;;  %v23_v11 = vld [vmem:[%s601_s1 + $0x10] sm:$0xff]  ;;  %v253_v6 = vstv %s604_s4 }
   0x4   :  { %340 = vmatprep.subr.msk.bf16.mxu0 %vm444_vm1, %v338_v4  ;;  %386 = vmatprep.subr.msk.bf16.mxu1 %vm444_vm1, %v338_v4  ;;  %v41_v12 = vld [vmem:[%s602_s2] sm:$0xff]  ;;  %v43_v13 = vld [vmem:[%s602_s2 + $0x10] sm:$0xff]  ;;  %v350_v14 = vpack.c.bf16 %v30_v10, %v29_v9  ;;  %v42_v15 = vld [vmem:[%s602_s2 + $0x8] sm:$0xff] }
   0x5   :  { %343 = vmatpush3.bf16.xpose.msk.msra.mxu0 %vm444_vm1, %v338_v4  ;;  %394 = vmatpush3.bf16.xpose.msk.msra.mxu1 %vm444_vm1, %v338_v4  ;;  %v44_v16 = vld [vmem:[%s602_s2 + $0x18] sm:$0xff]  ;;  %v31_v17 = vld [vmem:[%s600_s0 + $0x30] sm:$0xff]  ;;  %v215_v19 = vld [vmem:[%s603_s3] sm:$0xff] }
   0x6   :  { %346 = vmatprep.subr.msk.bf16.mxu0 %vm444_vm1, %v344_v7  ;;  %387 = vmatprep.subr.msk.bf16.mxu1 %vm444_vm1, %v344_v7  ;;  %v32_v18 = vld [vmem:[%s600_s0 + $0x38] sm:$0xff]  ;;  %v216_v20 = vld [vmem:[%s603_s3 + $0x8] sm:$0xff]  ;;  %v217_v22 = vld [vmem:[%s603_s3 + $0x10] sm:$0xff] }
   0x7   :  { %335 = vmatprep.mubr.msk.f32.mxu1 %vm65_vm0, %v23_v11  ;;  %47 = vperm.xlu0 %403, %v41_v12   ;;  %v356_v21 = vpack.c.bf16 %v32_v18, %v31_v17  ;;  %v218_v23 = vld [vmem:[%s603_s3 + $0x18] sm:$0xff]  ;;  %v33_v24 = vld [vmem:[%s600_s0 + $0x40] sm:$0xff]  ;;  %v34_v25 = vld [vmem:[%s600_s0 + $0x48] sm:$0xff] }
   0x8   :  { %57 = vperm.xlu1 %404, %v43_v13   ;;  %v362_v26 = vpack.c.bf16 %v34_v25, %v33_v24  ;;  %v35_v27 = vld [vmem:[%s600_s0 + $0x50] sm:$0xff]  ;;  %v36_v28 = vld [vmem:[%s600_s0 + $0x58] sm:$0xff]  ;;  %v37_v30 = vld [vmem:[%s600_s0 + $0x60] sm:$0xff] }
   0x9   :  { %v368_v29 = vpack.c.bf16 %v36_v28, %v35_v27  ;;  %v38_v31 = vld [vmem:[%s600_s0 + $0x68] sm:$0xff]  ;;  %v39_v33 = vld [vmem:[%s600_s0 + $0x70] sm:$0xff]  ;;  %v40_v34 = vld [vmem:[%s600_s0 + $0x78] sm:$0xff] }
   0xa   :  { %v374_v32 = vpack.c.bf16 %v38_v31, %v37_v30  ;;  %v380_v35 = vpack.c.bf16 %v40_v34, %v39_v33  ;;  %v22_v36 = vld [vmem:[%s601_s1 + $0x8] sm:$0xff]  ;;  %v24_v37 = vld [vmem:[%s601_s1 + $0x18] sm:$0xff] }
   0xb   :  { %52 = vperm.xlu0 %403, %v42_v15  }
   0xc   :  { %62 = vperm.xlu1 %404, %v44_v16  }
   0xd   :  { %349 = vmatpush3.bf16.xpose.msk.msra.mxu0 %vm444_vm1, %v344_v7  ;;  %395 = vmatpush3.bf16.xpose.msk.msra.mxu1 %vm444_vm1, %v344_v7 }
   0xe   :  { %352 = vmatprep.subr.msk.bf16.mxu0 %vm444_vm1, %v350_v14  ;;  %388 = vmatprep.subr.msk.bf16.mxu1 %vm444_vm1, %v350_v14 }
   0xf   :  { %221 = vperm.xlu0 %403, %v215_v19  }
  0x10   :  { %226 = vperm.xlu1 %404, %v216_v20  }
  0x13   :  { %231 = vperm.xlu0 %403, %v217_v22  }
  0x14   :  { %236 = vperm.xlu1 %404, %v218_v23  }
  0x15   :  { %355 = vmatpush3.bf16.xpose.msk.msra.mxu0 %vm444_vm1, %v350_v14  ;;  %396 = vmatpush3.bf16.xpose.msk.msra.mxu1 %vm444_vm1, %v350_v14 }
  0x16   :  { %358 = vmatprep.subr.msk.bf16.mxu0 %vm444_vm1, %v356_v21  ;;  %389 = vmatprep.subr.msk.bf16.mxu1 %vm444_vm1, %v356_v21 }
  0x1d   :  { %361 = vmatpush3.bf16.xpose.msk.msra.mxu0 %vm444_vm1, %v356_v21  ;;  %397 = vmatpush3.bf16.xpose.msk.msra.mxu1 %vm444_vm1, %v356_v21 }
  0x1e   :  { %364 = vmatprep.subr.msk.bf16.mxu0 %vm444_vm1, %v362_v26  ;;  %390 = vmatprep.subr.msk.bf16.mxu1 %vm444_vm1, %v362_v26 }
  0x25   :  { %367 = vmatpush3.bf16.xpose.msk.msra.mxu0 %vm444_vm1, %v362_v26  ;;  %398 = vmatpush3.bf16.xpose.msk.msra.mxu1 %vm444_vm1, %v362_v26 }
  0x26   :  { %370 = vmatprep.subr.msk.bf16.mxu0 %vm444_vm1, %v368_v29  ;;  %391 = vmatprep.subr.msk.bf16.mxu1 %vm444_vm1, %v368_v29 }
  0x2d   :  { %373 = vmatpush3.bf16.xpose.msk.msra.mxu0 %vm444_vm1, %v368_v29  ;;  %399 = vmatpush3.bf16.xpose.msk.msra.mxu1 %vm444_vm1, %v368_v29 }
  0x2e   :  { %376 = vmatprep.subr.msk.bf16.mxu0 %vm444_vm1, %v374_v32  ;;  %392 = vmatprep.subr.msk.bf16.mxu1 %vm444_vm1, %v374_v32 }
  0x35   :  { %379 = vmatpush3.bf16.xpose.msk.msra.mxu0 %vm444_vm1, %v374_v32  ;;  %400 = vmatpush3.bf16.xpose.msk.msra.mxu1 %vm444_vm1, %v374_v32 }
  0x36   :  { %382 = vmatprep.subr.msk.bf16.mxu0 %vm444_vm1, %v380_v35  ;;  %393 = vmatprep.subr.msk.bf16.mxu1 %vm444_vm1, %v380_v35 }
  0x3d   :  { %385 = vmatpush3.bf16.xpose.msk.msra.mxu0 %vm444_vm1, %v380_v35  ;;  %401 = vmatpush3.bf16.xpose.msk.msra.mxu1 %vm444_vm1, %v380_v35 }
  0x44   :  { %333 = vmatmul.mubr.msk.f32.vlgmr.msra.gmra.mrb[0].mxu0 %vm65_vm0, %v22_v36  ;;  %336 = vmatmul.mubr.msk.f32.vlgmr.msra.gmra.mrb[0].mxu1 %vm65_vm0, %v24_v37 }
  0x86   :  { %v48_v38 = vpop.permute.xlu0 %47 }
  0x87   :  { %v58_v39 = vpop.permute.xlu1 %57 }
  0x8a   :  { %v53_v40 = vpop.permute.xlu0 %52 }
  0x8b   :  { %v63_v41 = vpop.permute.xlu1 %62 }
  0x8e   :  { %v222_v42 = vpop.permute.xlu0 %221 }
  0x8f   :  { %v227_v51 = vpop.permute.xlu1 %226 }
  0x92   :  { %v232_v58 = vpop.permute.xlu0 %231 }
  0x93   :  { %v237_v61 = vpop.permute.xlu1 %236 }
 0x117   :  { %v334_v43 = vpop.f32.mrb[0].mxu0  ;;  %v337_v44 = vpop.f32.mrb[0].mxu1 }
 0x118   :  { %v198_v45 = vadd.f32 %v334_v43, %v53_v40  ;;  %v192_v46 = vpop.f32.mrb[1].mxu0  ;;  %v202_v47 = vpop.f32.mrb[1].mxu1  ;;  %v208_v48 = vadd.f32 %v337_v44, %v63_v41 }
 0x119   :  { %v193_v49 = vadd.f32 %v192_v46, %v48_v38  ;;  %v203_v50 = vadd.f32 %v202_v47, %v58_v39 }
 0x11a   :  { %v212_v52 = vmax.f32 %v198_v45, 0.0  ;;  %v214_v56 = vmax.f32 %v208_v48, 0.0 }
 0x11b   :  { %v211_v53 = vmax.f32 %v193_v49, 0.0  ;;  %v213_v54 = vmax.f32 %v203_v50, 0.0 }
 0x11c   :  { %v240_v55 = vmul.f32 %v227_v51, %v212_v52  ;;  %v242_v62 = vmul.f32 %v237_v61, %v214_v56 }
 0x11d   :  { %v239_v57 = vmul.f32 %v222_v42, %v211_v53  ;;  %v241_v60 = vmul.f32 %v232_v58, %v213_v54 }
 0x11f   :  { %v243_v59 = vadd.f32 %v240_v55, %v239_v57 }
 0x121   :  { %v244_v63 = vadd.f32 %v243_v59, %v241_v60 }
 0x123   :  { %v245_v0 = vadd.f32 %v244_v63, %v242_v62 }
 0x125   :  { %v246_v1 = vrot.slane %v245_v0, 4 }
 0x127   :  { %v247_v2 = vadd.f32 %v246_v1, %v245_v0 }
 0x129   :  { %v248_v3 = vrot.slane %v247_v2, 2 }
 0x12b   :  { %v249_v4 = vadd.f32 %v248_v3, %v247_v2 }
 0x12d   :  { %v250_v5 = vrot.slane %v249_v4, 1 }
 0x12f   :  { %v251_v7 = vadd.f32 %v250_v5, %v249_v4 }
 0x131   :  { %v254_v8 = vadd.f32 %v253_v6, %v251_v7 }
 0x133   :  { %255 = vst [vmem:[%s605_s5] sm:$0x1] %v254_v8 }

</bundles_post_ra>
